<compile_context>
chip_gen: v7x
topology: tpu7x:2x2x1
jax: 0.10.0
libtpu: 0.0.40
codegen_flags: <defaults>
</compile_context>

<pallas_src>
import functools

import jax
import jax.numpy as jnp
from jax.experimental import pallas as pl
from jax.experimental.pallas import tpu as pltpu


def _attention_kernel(xq_ref, xkv_ref, wq_ref, wkv_ref, wp_ref, bp_ref, o_ref,
                      *, num_heads, head_dim):
    C = num_heads * head_dim

    xq = xq_ref[0]       # (tq, C)  rows whose queries this grid step produces
    xkv = xkv_ref[0]     # (N,  C)  full sequence, used for K and V

    # Fused, lane-dense projections (qkv_bias=False).  Scale pre-folded into W_q.
    q_all = jnp.dot(xq, wq_ref[...], preferred_element_type=jnp.float32)     # (tq, C)
    kv_all = jnp.dot(xkv, wkv_ref[...], preferred_element_type=jnp.float32)  # (N, 2C)

    head_outs = []
    for h in range(num_heads):           # static unroll over heads
        lo, hi = h * head_dim, (h + 1) * head_dim
        qh = q_all[:, lo:hi]             # (tq, hd)
        kh = kv_all[:, lo:hi]            # (N,  hd)
        vh = kv_all[:, C + lo:C + hi]    # (N,  hd)

        # Softmax kept in f32 on the VPU/EUP; only matmuls hit the MXU.
        s = jnp.dot(qh, kh.T, preferred_element_type=jnp.float32)            # (tq, N)
        s = s - jnp.max(s, axis=-1, keepdims=True)
        p = jnp.exp(s)
        denom = jnp.sum(p, axis=-1, keepdims=True)                           # (tq, 1)
        pv = jnp.dot(p, vh, preferred_element_type=jnp.float32)              # (tq, hd)
        # Fold 1/sum into the small (tq, hd) tensor; approx reciprocal -> EUP slot.
        head_outs.append(pv * pl.reciprocal(denom, approx=True))

    # Concat of head outputs == the reference's transpose(1,2).reshape(B,N,C).
    o_cat = jnp.concatenate(head_outs, axis=-1)                              # (tq, C)

    # Single fused output projection (full-depth contraction) + bias once.
    out = jnp.dot(o_cat, wp_ref[...], preferred_element_type=jnp.float32)
    out = out + bp_ref[...]
    o_ref[0] = out.astype(o_ref.dtype)


def _pick_q_block(n):
    """Largest nice q-row tile that divides N; fall back to the whole sequence."""
    for cand in (512, 256, 128):
        if n % cand == 0:
            return cand
    return n


def original_attention(x, w_qkv, w_proj, b_proj, num_heads, q_block=None):
    """x: (B, N, C); w_qkv: (3C, C) torch (out,in) layout; w_proj: (C, C); b_proj: (C,)."""
    B, N, C = x.shape
    assert C % num_heads == 0, "dim must be divisible by num_heads"
    hd = C // num_heads
    scale = hd ** -0.5

    tq = q_block if q_block is not None else _pick_q_block(N)
    assert N % tq == 0
    n_q = N // tq

    # One-time weight repack (torch nn.Linear is (out, in); y = x @ W.T).
    wq = (w_qkv[:C].T * scale).astype(x.dtype)    # (C, C)  scale folded into W_q
    wkv = w_qkv[C:].T.astype(x.dtype)             # (C, 2C) columns = [K | V]
    wp = w_proj.T.astype(x.dtype)                 # (C, C)
    bp = b_proj.reshape(1, C).astype(jnp.float32)

    kernel = functools.partial(_attention_kernel, num_heads=num_heads, head_dim=hd)

    return pl.pallas_call(
        kernel,
        out_shape=jax.ShapeDtypeStruct((B, N, C), x.dtype),
        grid=(B, n_q),
        in_specs=[
            pl.BlockSpec((1, tq, C), lambda b, i: (b, i, 0)),   # x rows for Q
            pl.BlockSpec((1, N, C), lambda b, i: (b, 0, 0)),    # full x for K/V
            pl.BlockSpec((C, C), lambda b, i: (0, 0)),          # W_q (scaled)
            pl.BlockSpec((C, 2 * C), lambda b, i: (0, 0)),      # W_kv
            pl.BlockSpec((C, C), lambda b, i: (0, 0)),          # W_proj^T
            pl.BlockSpec((1, C), lambda b, i: (0, 0)),          # proj bias
        ],
        out_specs=pl.BlockSpec((1, tq, C), lambda b, i: (b, i, 0)),
        compiler_params=pltpu.CompilerParams(
            dimension_semantics=("parallel", "parallel"),
            vmem_limit_bytes=32 * 1024 * 1024,   # explicit budget; safe on v5e/v6e/v7x
        ),
    )(x, x, wq, wkv, wp, bp)


def reference(x, w_qkv, w_proj, b_proj, num_heads):
    """Pure-JAX transcription of the PyTorch forward, for verification."""
    B, N, C = x.shape
    hd = C // num_heads
    scale = hd ** -0.5
    qkv = x @ w_qkv.T                                               # (B, N, 3C)
    qkv = qkv.reshape(B, N, 3, num_heads, hd).transpose(2, 0, 3, 1, 4)
    q, k, v = qkv[0], qkv[1], qkv[2]                                # (B, H, N, hd)
    q = q * scale
    attn = jax.nn.softmax(q @ jnp.swapaxes(k, -2, -1), axis=-1)
    o = attn @ v                                                    # (B, H, N, hd)
    o = jnp.swapaxes(o, 1, 2).reshape(B, N, C)
    return o @ w_proj.T + b_proj


if __name__ == "__main__":
    B, N, C, H = 2, 8, 32, 8   # dim=32, num_heads=8 -> head_dim=4

    key = jax.random.PRNGKey(0)
    k1, k2, k3, k4 = jax.random.split(key, 4)
    x = jax.random.normal(k1, (B, N, C), dtype=jnp.float32)
    w_qkv = jax.random.normal(k2, (3 * C, C), dtype=jnp.float32) * 0.05   # nn.Linear(dim, 3*dim).weight
    w_proj = jax.random.normal(k3, (C, C), dtype=jnp.float32) * 0.05      # nn.Linear(dim, dim).weight
    b_proj = jax.random.normal(k4, (C,), dtype=jnp.float32) * 0.01        # nn.Linear(dim, dim).bias

    out = original_attention(x, w_qkv, w_proj, b_proj, num_heads=H)
    out = jax.block_until_ready(out)

    ref = reference(x, w_qkv, w_proj, b_proj, H)
    # Tolerance accounts for the approximate (EUP) reciprocal in the softmax denom.
    if not jnp.allclose(out, ref, atol=2e-3, rtol=2e-3):
        raise AssertionError("Pallas kernel output does not match reference")

    print("KERNEL_OK")
</pallas_src>

<mosaic_0001>
module attributes {stable_mosaic.version = 11 : i64} {
  func.func @_attention_kernel(%arg0: i32, %arg1: i32, %arg2: memref<1x8x32xf32, #tpu.memory_space<vmem>>, %arg3: memref<1x8x32xf32, #tpu.memory_space<vmem>>, %arg4: memref<32x32xf32, #tpu.memory_space<vmem>>, %arg5: memref<32x64xf32, #tpu.memory_space<vmem>>, %arg6: memref<32x32xf32, #tpu.memory_space<vmem>>, %arg7: memref<1x32xf32, #tpu.memory_space<vmem>>, %arg8: memref<1x8x32xf32, #tpu.memory_space<vmem>>) attributes {dimension_semantics = [#tpu.dimension_semantics<parallel>, #tpu.dimension_semantics<parallel>], iteration_bounds = array<i64: 2, 1>, scalar_prefetch = 0 : i64, scratch_operands = 0 : i64, tpu.core_type = #tpu.core_type<tc>, window_params = [{transform_indices = @transform_0, window_bounds = array<i64: 1, 8, 32>}, {transform_indices = @transform_1, window_bounds = array<i64: 1, 8, 32>}, {pipeline_mode = #tpu.pipeline_mode<synchronous>, transform_indices = @transform_2, window_bounds = array<i64: 32, 32>}, {pipeline_mode = #tpu.pipeline_mode<synchronous>, transform_indices = @transform_3, window_bounds = array<i64: 32, 64>}, {pipeline_mode = #tpu.pipeline_mode<synchronous>, transform_indices = @transform_4, window_bounds = array<i64: 32, 32>}, {pipeline_mode = #tpu.pipeline_mode<synchronous>, transform_indices = @transform_5, window_bounds = array<i64: 1, 32>}, {transform_indices = @transform_6, window_bounds = array<i64: 1, 8, 32>}]} {
    %c0 = arith.constant 0 : index
    %c0_0 = arith.constant 0 : index
    %c0_1 = arith.constant 0 : index
    %0 = vector.load %arg2[%c0, %c0_0, %c0_1] : memref<1x8x32xf32, #tpu.memory_space<vmem>>, vector<1x8x32xf32>
    %1 = vector.shape_cast %0 : vector<1x8x32xf32> to vector<8x32xf32>
    %c0_2 = arith.constant 0 : index
    %c0_3 = arith.constant 0 : index
    %c0_4 = arith.constant 0 : index
    %2 = vector.load %arg3[%c0_2, %c0_3, %c0_4] : memref<1x8x32xf32, #tpu.memory_space<vmem>>, vector<1x8x32xf32>
    %3 = vector.shape_cast %2 : vector<1x8x32xf32> to vector<8x32xf32>
    %c0_5 = arith.constant 0 : index
    %c0_6 = arith.constant 0 : index
    %4 = vector.load %arg4[%c0_5, %c0_6] : memref<32x32xf32, #tpu.memory_space<vmem>>, vector<32x32xf32>
    %cst = arith.constant dense<0.000000e+00> : vector<8x32xf32>
    %5 = tpu.matmul %1, %4, %cst {dimension_numbers = #tpu.dot_dimension_numbers<[1], [0], [0], [1], [0, 0, 1, 1], [], []>} : vector<8x32xf32>, vector<32x32xf32>, vector<8x32xf32> -> vector<8x32xf32>
    %c0_7 = arith.constant 0 : index
    %c0_8 = arith.constant 0 : index
    %6 = vector.load %arg5[%c0_7, %c0_8] : memref<32x64xf32, #tpu.memory_space<vmem>>, vector<32x64xf32>
    %cst_9 = arith.constant dense<0.000000e+00> : vector<8x64xf32>
    %7 = tpu.matmul %3, %6, %cst_9 {dimension_numbers = #tpu.dot_dimension_numbers<[1], [0], [0], [1], [0, 0, 1, 1], [], []>} : vector<8x32xf32>, vector<32x64xf32>, vector<8x64xf32> -> vector<8x64xf32>
    %8 = vector.extract_strided_slice %5 {offsets = [0, 0], sizes = [8, 4], strides = [1, 1]} : vector<8x32xf32> to vector<8x4xf32>
    %9 = vector.extract_strided_slice %7 {offsets = [0, 0], sizes = [8, 4], strides = [1, 1]} : vector<8x64xf32> to vector<8x4xf32>
    %10 = vector.extract_strided_slice %7 {offsets = [0, 32], sizes = [8, 4], strides = [1, 1]} : vector<8x64xf32> to vector<8x4xf32>
    %11 = tpu.transpose %9, [1, 0] : vector<8x4xf32> -> vector<4x8xf32>
    %cst_10 = arith.constant dense<0.000000e+00> : vector<8x8xf32>
    %12 = tpu.matmul %8, %11, %cst_10 {dimension_numbers = #tpu.dot_dimension_numbers<[1], [0], [0], [1], [0, 0, 1, 1], [], []>} : vector<8x4xf32>, vector<4x8xf32>, vector<8x8xf32> -> vector<8x8xf32>
    %cst_11 = arith.constant dense<0xFF800000> : vector<8xf32>
    %13 = vector.multi_reduction <maximumf>, %12, %cst_11 [1] : vector<8x8xf32> to vector<8xf32>
    %14 = vector.shape_cast %13 : vector<8xf32> to vector<8x1xf32>
    %15 = vector.broadcast %14 : vector<8x1xf32> to vector<8x8xf32>
    %16 = arith.subf %12, %15 : vector<8x8xf32>
    %17 = math.exp %16 : vector<8x8xf32>
    %cst_12 = arith.constant dense<0.000000e+00> : vector<8xf32>
    %18 = vector.multi_reduction <add>, %17, %cst_12 [1] : vector<8x8xf32> to vector<8xf32>
    %19 = vector.shape_cast %18 : vector<8xf32> to vector<8x1xf32>
    %cst_13 = arith.constant dense<0.000000e+00> : vector<8x4xf32>
    %20 = tpu.matmul %17, %10, %cst_13 {dimension_numbers = #tpu.dot_dimension_numbers<[1], [0], [0], [1], [0, 0, 1, 1], [], []>} : vector<8x8xf32>, vector<8x4xf32>, vector<8x4xf32> -> vector<8x4xf32>
    %21 = tpu.reciprocal %19 {approx = true} : vector<8x1xf32> -> vector<8x1xf32>
    %22 = vector.broadcast %21 : vector<8x1xf32> to vector<8x4xf32>
    %23 = arith.mulf %20, %22 : vector<8x4xf32>
    %24 = vector.extract_strided_slice %5 {offsets = [0, 4], sizes = [8, 4], strides = [1, 1]} : vector<8x32xf32> to vector<8x4xf32>
    %25 = vector.extract_strided_slice %7 {offsets = [0, 4], sizes = [8, 4], strides = [1, 1]} : vector<8x64xf32> to vector<8x4xf32>
    %26 = vector.extract_strided_slice %7 {offsets = [0, 36], sizes = [8, 4], strides = [1, 1]} : vector<8x64xf32> to vector<8x4xf32>
    %27 = tpu.transpose %25, [1, 0] : vector<8x4xf32> -> vector<4x8xf32>
    %cst_14 = arith.constant dense<0.000000e+00> : vector<8x8xf32>
    %28 = tpu.matmul %24, %27, %cst_14 {dimension_numbers = #tpu.dot_dimension_numbers<[1], [0], [0], [1], [0, 0, 1, 1], [], []>} : vector<8x4xf32>, vector<4x8xf32>, vector<8x8xf32> -> vector<8x8xf32>
    %cst_15 = arith.constant dense<0xFF800000> : vector<8xf32>
    %29 = vector.multi_reduction <maximumf>, %28, %cst_15 [1] : vector<8x8xf32> to vector<8xf32>
    %30 = vector.shape_cast %29 : vector<8xf32> to vector<8x1xf32>
    %31 = vector.broadcast %30 : vector<8x1xf32> to vector<8x8xf32>
    %32 = arith.subf %28, %31 : vector<8x8xf32>
    %33 = math.exp %32 : vector<8x8xf32>
    %cst_16 = arith.constant dense<0.000000e+00> : vector<8xf32>
    %34 = vector.multi_reduction <add>, %33, %cst_16 [1] : vector<8x8xf32> to vector<8xf32>
    %35 = vector.shape_cast %34 : vector<8xf32> to vector<8x1xf32>
    %cst_17 = arith.constant dense<0.000000e+00> : vector<8x4xf32>
    %36 = tpu.matmul %33, %26, %cst_17 {dimension_numbers = #tpu.dot_dimension_numbers<[1], [0], [0], [1], [0, 0, 1, 1], [], []>} : vector<8x8xf32>, vector<8x4xf32>, vector<8x4xf32> -> vector<8x4xf32>
    %37 = tpu.reciprocal %35 {approx = true} : vector<8x1xf32> -> vector<8x1xf32>
    %38 = vector.broadcast %37 : vector<8x1xf32> to vector<8x4xf32>
    %39 = arith.mulf %36, %38 : vector<8x4xf32>
    %40 = vector.extract_strided_slice %5 {offsets = [0, 8], sizes = [8, 4], strides = [1, 1]} : vector<8x32xf32> to vector<8x4xf32>
    %41 = vector.extract_strided_slice %7 {offsets = [0, 8], sizes = [8, 4], strides = [1, 1]} : vector<8x64xf32> to vector<8x4xf32>
    %42 = vector.extract_strided_slice %7 {offsets = [0, 40], sizes = [8, 4], strides = [1, 1]} : vector<8x64xf32> to vector<8x4xf32>
    %43 = tpu.transpose %41, [1, 0] : vector<8x4xf32> -> vector<4x8xf32>
    %cst_18 = arith.constant dense<0.000000e+00> : vector<8x8xf32>
    %44 = tpu.matmul %40, %43, %cst_18 {dimension_numbers = #tpu.dot_dimension_numbers<[1], [0], [0], [1], [0, 0, 1, 1], [], []>} : vector<8x4xf32>, vector<4x8xf32>, vector<8x8xf32> -> vector<8x8xf32>
    %cst_19 = arith.constant dense<0xFF800000> : vector<8xf32>
    %45 = vector.multi_reduction <maximumf>, %44, %cst_19 [1] : vector<8x8xf32> to vector<8xf32>
    %46 = vector.shape_cast %45 : vector<8xf32> to vector<8x1xf32>
    %47 = vector.broadcast %46 : vector<8x1xf32> to vector<8x8xf32>
    %48 = arith.subf %44, %47 : vector<8x8xf32>
    %49 = math.exp %48 : vector<8x8xf32>
    %cst_20 = arith.constant dense<0.000000e+00> : vector<8xf32>
    %50 = vector.multi_reduction <add>, %49, %cst_20 [1] : vector<8x8xf32> to vector<8xf32>
    %51 = vector.shape_cast %50 : vector<8xf32> to vector<8x1xf32>
    %cst_21 = arith.constant dense<0.000000e+00> : vector<8x4xf32>
    %52 = tpu.matmul %49, %42, %cst_21 {dimension_numbers = #tpu.dot_dimension_numbers<[1], [0], [0], [1], [0, 0, 1, 1], [], []>} : vector<8x8xf32>, vector<8x4xf32>, vector<8x4xf32> -> vector<8x4xf32>
    %53 = tpu.reciprocal %51 {approx = true} : vector<8x1xf32> -> vector<8x1xf32>
    %54 = vector.broadcast %53 : vector<8x1xf32> to vector<8x4xf32>
    %55 = arith.mulf %52, %54 : vector<8x4xf32>
    %56 = vector.extract_strided_slice %5 {offsets = [0, 12], sizes = [8, 4], strides = [1, 1]} : vector<8x32xf32> to vector<8x4xf32>
    %57 = vector.extract_strided_slice %7 {offsets = [0, 12], sizes = [8, 4], strides = [1, 1]} : vector<8x64xf32> to vector<8x4xf32>
    %58 = vector.extract_strided_slice %7 {offsets = [0, 44], sizes = [8, 4], strides = [1, 1]} : vector<8x64xf32> to vector<8x4xf32>
    %59 = tpu.transpose %57, [1, 0] : vector<8x4xf32> -> vector<4x8xf32>
    %cst_22 = arith.constant dense<0.000000e+00> : vector<8x8xf32>
    %60 = tpu.matmul %56, %59, %cst_22 {dimension_numbers = #tpu.dot_dimension_numbers<[1], [0], [0], [1], [0, 0, 1, 1], [], []>} : vector<8x4xf32>, vector<4x8xf32>, vector<8x8xf32> -> vector<8x8xf32>
    %cst_23 = arith.constant dense<0xFF800000> : vector<8xf32>
    %61 = vector.multi_reduction <maximumf>, %60, %cst_23 [1] : vector<8x8xf32> to vector<8xf32>
    %62 = vector.shape_cast %61 : vector<8xf32> to vector<8x1xf32>
    %63 = vector.broadcast %62 : vector<8x1xf32> to vector<8x8xf32>
    %64 = arith.subf %60, %63 : vector<8x8xf32>
    %65 = math.exp %64 : vector<8x8xf32>
    %cst_24 = arith.constant dense<0.000000e+00> : vector<8xf32>
    %66 = vector.multi_reduction <add>, %65, %cst_24 [1] : vector<8x8xf32> to vector<8xf32>
    %67 = vector.shape_cast %66 : vector<8xf32> to vector<8x1xf32>
    %cst_25 = arith.constant dense<0.000000e+00> : vector<8x4xf32>
    %68 = tpu.matmul %65, %58, %cst_25 {dimension_numbers = #tpu.dot_dimension_numbers<[1], [0], [0], [1], [0, 0, 1, 1], [], []>} : vector<8x8xf32>, vector<8x4xf32>, vector<8x4xf32> -> vector<8x4xf32>
    %69 = tpu.reciprocal %67 {approx = true} : vector<8x1xf32> -> vector<8x1xf32>
    %70 = vector.broadcast %69 : vector<8x1xf32> to vector<8x4xf32>
    %71 = arith.mulf %68, %70 : vector<8x4xf32>
    %72 = vector.extract_strided_slice %5 {offsets = [0, 16], sizes = [8, 4], strides = [1, 1]} : vector<8x32xf32> to vector<8x4xf32>
    %73 = vector.extract_strided_slice %7 {offsets = [0, 16], sizes = [8, 4], strides = [1, 1]} : vector<8x64xf32> to vector<8x4xf32>
    %74 = vector.extract_strided_slice %7 {offsets = [0, 48], sizes = [8, 4], strides = [1, 1]} : vector<8x64xf32> to vector<8x4xf32>
    %75 = tpu.transpose %73, [1, 0] : vector<8x4xf32> -> vector<4x8xf32>
    %cst_26 = arith.constant dense<0.000000e+00> : vector<8x8xf32>
    %76 = tpu.matmul %72, %75, %cst_26 {dimension_numbers = #tpu.dot_dimension_numbers<[1], [0], [0], [1], [0, 0, 1, 1], [], []>} : vector<8x4xf32>, vector<4x8xf32>, vector<8x8xf32> -> vector<8x8xf32>
    %cst_27 = arith.constant dense<0xFF800000> : vector<8xf32>
    %77 = vector.multi_reduction <maximumf>, %76, %cst_27 [1] : vector<8x8xf32> to vector<8xf32>
    %78 = vector.shape_cast %77 : vector<8xf32> to vector<8x1xf32>
    %79 = vector.broadcast %78 : vector<8x1xf32> to vector<8x8xf32>
    %80 = arith.subf %76, %79 : vector<8x8xf32>
    %81 = math.exp %80 : vector<8x8xf32>
    %cst_28 = arith.constant dense<0.000000e+00> : vector<8xf32>
    %82 = vector.multi_reduction <add>, %81, %cst_28 [1] : vector<8x8xf32> to vector<8xf32>
    %83 = vector.shape_cast %82 : vector<8xf32> to vector<8x1xf32>
    %cst_29 = arith.constant dense<0.000000e+00> : vector<8x4xf32>
    %84 = tpu.matmul %81, %74, %cst_29 {dimension_numbers = #tpu.dot_dimension_numbers<[1], [0], [0], [1], [0, 0, 1, 1], [], []>} : vector<8x8xf32>, vector<8x4xf32>, vector<8x4xf32> -> vector<8x4xf32>
    %85 = tpu.reciprocal %83 {approx = true} : vector<8x1xf32> -> vector<8x1xf32>
    %86 = vector.broadcast %85 : vector<8x1xf32> to vector<8x4xf32>
    %87 = arith.mulf %84, %86 : vector<8x4xf32>
    %88 = vector.extract_strided_slice %5 {offsets = [0, 20], sizes = [8, 4], strides = [1, 1]} : vector<8x32xf32> to vector<8x4xf32>
    %89 = vector.extract_strided_slice %7 {offsets = [0, 20], sizes = [8, 4], strides = [1, 1]} : vector<8x64xf32> to vector<8x4xf32>
    %90 = vector.extract_strided_slice %7 {offsets = [0, 52], sizes = [8, 4], strides = [1, 1]} : vector<8x64xf32> to vector<8x4xf32>
    %91 = tpu.transpose %89, [1, 0] : vector<8x4xf32> -> vector<4x8xf32>
    %cst_30 = arith.constant dense<0.000000e+00> : vector<8x8xf32>
    %92 = tpu.matmul %88, %91, %cst_30 {dimension_numbers = #tpu.dot_dimension_numbers<[1], [0], [0], [1], [0, 0, 1, 1], [], []>} : vector<8x4xf32>, vector<4x8xf32>, vector<8x8xf32> -> vector<8x8xf32>
    %cst_31 = arith.constant dense<0xFF800000> : vector<8xf32>
    %93 = vector.multi_reduction <maximumf>, %92, %cst_31 [1] : vector<8x8xf32> to vector<8xf32>
    %94 = vector.shape_cast %93 : vector<8xf32> to vector<8x1xf32>
    %95 = vector.broadcast %94 : vector<8x1xf32> to vector<8x8xf32>
    %96 = arith.subf %92, %95 : vector<8x8xf32>
    %97 = math.exp %96 : vector<8x8xf32>
    %cst_32 = arith.constant dense<0.000000e+00> : vector<8xf32>
    %98 = vector.multi_reduction <add>, %97, %cst_32 [1] : vector<8x8xf32> to vector<8xf32>
    %99 = vector.shape_cast %98 : vector<8xf32> to vector<8x1xf32>
    %cst_33 = arith.constant dense<0.000000e+00> : vector<8x4xf32>
    %100 = tpu.matmul %97, %90, %cst_33 {dimension_numbers = #tpu.dot_dimension_numbers<[1], [0], [0], [1], [0, 0, 1, 1], [], []>} : vector<8x8xf32>, vector<8x4xf32>, vector<8x4xf32> -> vector<8x4xf32>
    %101 = tpu.reciprocal %99 {approx = true} : vector<8x1xf32> -> vector<8x1xf32>
    %102 = vector.broadcast %101 : vector<8x1xf32> to vector<8x4xf32>
    %103 = arith.mulf %100, %102 : vector<8x4xf32>
    %104 = vector.extract_strided_slice %5 {offsets = [0, 24], sizes = [8, 4], strides = [1, 1]} : vector<8x32xf32> to vector<8x4xf32>
    %105 = vector.extract_strided_slice %7 {offsets = [0, 24], sizes = [8, 4], strides = [1, 1]} : vector<8x64xf32> to vector<8x4xf32>
    %106 = vector.extract_strided_slice %7 {offsets = [0, 56], sizes = [8, 4], strides = [1, 1]} : vector<8x64xf32> to vector<8x4xf32>
    %107 = tpu.transpose %105, [1, 0] : vector<8x4xf32> -> vector<4x8xf32>
    %cst_34 = arith.constant dense<0.000000e+00> : vector<8x8xf32>
    %108 = tpu.matmul %104, %107, %cst_34 {dimension_numbers = #tpu.dot_dimension_numbers<[1], [0], [0], [1], [0, 0, 1, 1], [], []>} : vector<8x4xf32>, vector<4x8xf32>, vector<8x8xf32> -> vector<8x8xf32>
    %cst_35 = arith.constant dense<0xFF800000> : vector<8xf32>
    %109 = vector.multi_reduction <maximumf>, %108, %cst_35 [1] : vector<8x8xf32> to vector<8xf32>
    %110 = vector.shape_cast %109 : vector<8xf32> to vector<8x1xf32>
    %111 = vector.broadcast %110 : vector<8x1xf32> to vector<8x8xf32>
    %112 = arith.subf %108, %111 : vector<8x8xf32>
    %113 = math.exp %112 : vector<8x8xf32>
    %cst_36 = arith.constant dense<0.000000e+00> : vector<8xf32>
    %114 = vector.multi_reduction <add>, %113, %cst_36 [1] : vector<8x8xf32> to vector<8xf32>
    %115 = vector.shape_cast %114 : vector<8xf32> to vector<8x1xf32>
    %cst_37 = arith.constant dense<0.000000e+00> : vector<8x4xf32>
    %116 = tpu.matmul %113, %106, %cst_37 {dimension_numbers = #tpu.dot_dimension_numbers<[1], [0], [0], [1], [0, 0, 1, 1], [], []>} : vector<8x8xf32>, vector<8x4xf32>, vector<8x4xf32> -> vector<8x4xf32>
    %117 = tpu.reciprocal %115 {approx = true} : vector<8x1xf32> -> vector<8x1xf32>
    %118 = vector.broadcast %117 : vector<8x1xf32> to vector<8x4xf32>
    %119 = arith.mulf %116, %118 : vector<8x4xf32>
    %120 = vector.extract_strided_slice %5 {offsets = [0, 28], sizes = [8, 4], strides = [1, 1]} : vector<8x32xf32> to vector<8x4xf32>
    %121 = vector.extract_strided_slice %7 {offsets = [0, 28], sizes = [8, 4], strides = [1, 1]} : vector<8x64xf32> to vector<8x4xf32>
    %122 = vector.extract_strided_slice %7 {offsets = [0, 60], sizes = [8, 4], strides = [1, 1]} : vector<8x64xf32> to vector<8x4xf32>
    %123 = tpu.transpose %121, [1, 0] : vector<8x4xf32> -> vector<4x8xf32>
    %cst_38 = arith.constant dense<0.000000e+00> : vector<8x8xf32>
    %124 = tpu.matmul %120, %123, %cst_38 {dimension_numbers = #tpu.dot_dimension_numbers<[1], [0], [0], [1], [0, 0, 1, 1], [], []>} : vector<8x4xf32>, vector<4x8xf32>, vector<8x8xf32> -> vector<8x8xf32>
    %cst_39 = arith.constant dense<0xFF800000> : vector<8xf32>
    %125 = vector.multi_reduction <maximumf>, %124, %cst_39 [1] : vector<8x8xf32> to vector<8xf32>
    %126 = vector.shape_cast %125 : vector<8xf32> to vector<8x1xf32>
    %127 = vector.broadcast %126 : vector<8x1xf32> to vector<8x8xf32>
    %128 = arith.subf %124, %127 : vector<8x8xf32>
    %129 = math.exp %128 : vector<8x8xf32>
    %cst_40 = arith.constant dense<0.000000e+00> : vector<8xf32>
    %130 = vector.multi_reduction <add>, %129, %cst_40 [1] : vector<8x8xf32> to vector<8xf32>
    %131 = vector.shape_cast %130 : vector<8xf32> to vector<8x1xf32>
    %cst_41 = arith.constant dense<0.000000e+00> : vector<8x4xf32>
    %132 = tpu.matmul %129, %122, %cst_41 {dimension_numbers = #tpu.dot_dimension_numbers<[1], [0], [0], [1], [0, 0, 1, 1], [], []>} : vector<8x8xf32>, vector<8x4xf32>, vector<8x4xf32> -> vector<8x4xf32>
    %133 = tpu.reciprocal %131 {approx = true} : vector<8x1xf32> -> vector<8x1xf32>
    %134 = vector.broadcast %133 : vector<8x1xf32> to vector<8x4xf32>
    %135 = arith.mulf %132, %134 : vector<8x4xf32>
    %136 = tpu.concatenate %23, %39, %55, %71, %87, %103, %119, %135 in 1 : vector<8x4xf32>, vector<8x4xf32>, vector<8x4xf32>, vector<8x4xf32>, vector<8x4xf32>, vector<8x4xf32>, vector<8x4xf32>, vector<8x4xf32> -> vector<8x32xf32>
    %c0_42 = arith.constant 0 : index
    %c0_43 = arith.constant 0 : index
    %137 = vector.load %arg6[%c0_42, %c0_43] : memref<32x32xf32, #tpu.memory_space<vmem>>, vector<32x32xf32>
    %cst_44 = arith.constant dense<0.000000e+00> : vector<8x32xf32>
    %138 = tpu.matmul %136, %137, %cst_44 {dimension_numbers = #tpu.dot_dimension_numbers<[1], [0], [0], [1], [0, 0, 1, 1], [], []>} : vector<8x32xf32>, vector<32x32xf32>, vector<8x32xf32> -> vector<8x32xf32>
    %c0_45 = arith.constant 0 : index
    %c0_46 = arith.constant 0 : index
    %139 = vector.load %arg7[%c0_45, %c0_46] : memref<1x32xf32, #tpu.memory_space<vmem>>, vector<1x32xf32>
    %140 = vector.broadcast %139 : vector<1x32xf32> to vector<8x32xf32>
    %141 = arith.addf %138, %140 : vector<8x32xf32>
    %c0_47 = arith.constant 0 : index
    %c0_48 = arith.constant 0 : index
    %c0_49 = arith.constant 0 : index
    %142 = vector.load %arg8[%c0_47, %c0_48, %c0_49] : memref<1x8x32xf32, #tpu.memory_space<vmem>>, vector<1x8x32xf32>
    %143 = vector.shape_cast %142 : vector<1x8x32xf32> to vector<8x32xf32>
    %144 = vector.shape_cast %141 : vector<8x32xf32> to vector<1x8x32xf32>
    tpu.vector_store %arg8[%c0_47, %c0_48, %c0_49], %144 {strides = array<i32>} : memref<1x8x32xf32, #tpu.memory_space<vmem>>, vector<1x8x32xf32>,
    return
  }
  func.func @transform_0(%arg0: i32, %arg1: i32) -> (i32, i32, i32) {
    %c0_i32 = arith.constant 0 : i32
    %c0_i32_0 = arith.constant 0 : i32
    return %arg0, %arg1, %c0_i32 : i32, i32, i32
  }
  func.func @transform_1(%arg0: i32, %arg1: i32) -> (i32, i32, i32) {
    %c0_i32 = arith.constant 0 : i32
    %c0_i32_0 = arith.constant 0 : i32
    %c0_i32_1 = arith.constant 0 : i32
    return %arg0, %c0_i32, %c0_i32_0 : i32, i32, i32
  }
  func.func @transform_2(%arg0: i32, %arg1: i32) -> (i32, i32) {
    %c0_i32 = arith.constant 0 : i32
    %c0_i32_0 = arith.constant 0 : i32
    %c0_i32_1 = arith.constant 0 : i32
    return %c0_i32, %c0_i32_0 : i32, i32
  }
  func.func @transform_3(%arg0: i32, %arg1: i32) -> (i32, i32) {
    %c0_i32 = arith.constant 0 : i32
    %c0_i32_0 = arith.constant 0 : i32
    %c0_i32_1 = arith.constant 0 : i32
    return %c0_i32, %c0_i32_0 : i32, i32
  }
  func.func @transform_4(%arg0: i32, %arg1: i32) -> (i32, i32) {
    %c0_i32 = arith.constant 0 : i32
    %c0_i32_0 = arith.constant 0 : i32
    %c0_i32_1 = arith.constant 0 : i32
    return %c0_i32, %c0_i32_0 : i32, i32
  }
  func.func @transform_5(%arg0: i32, %arg1: i32) -> (i32, i32) {
    %c0_i32 = arith.constant 0 : i32
    %c0_i32_0 = arith.constant 0 : i32
    %c0_i32_1 = arith.constant 0 : i32
    return %c0_i32, %c0_i32_0 : i32, i32
  }
  func.func @transform_6(%arg0: i32, %arg1: i32) -> (i32, i32, i32) {
    %c0_i32 = arith.constant 0 : i32
    %c0_i32_0 = arith.constant 0 : i32
    return %arg0, %arg1, %c0_i32 : i32, i32, i32
  }
}

</mosaic_0001>

<bundles_post_ra>
// kernel: tpu_custom_call.1
= control target key start
LH: loop header
LB: loop body
LE: loop exit
PB: predicated region body
PF: predicated region fallthrough
CT: control target
= control target key end

     0   :  { %s3272_s0 = inlined_call_operand.hbm [shape: f32[2,8,32], index: 0, kind: input, shape index: {}]   ;;  %s3273_s1 = inlined_call_operand.hbm [shape: f32[2,8,32], index: 1, kind: input, shape index: {}]   ;;  %s3274_s2 = inlined_call_operand.hbm [shape: f32[32,32], index: 2, kind: input, shape index: {}]   ;;  %s3275_s3 = inlined_call_operand.hbm [shape: f32[32,64], index: 3, kind: input, shape index: {}]   ;;  %s3276_s4 = inlined_call_operand.hbm [shape: f32[32,32], index: 4, kind: input, shape index: {}]   ;;  %s3277_s5 = inlined_call_operand.vmem [shape: f32[1,32], index: 5, kind: input, shape index: {}]   ;;  %s3278_s6 = inlined_call_operand.hbm [shape: f32[2,8,32], index: 6, kind: output, shape index: {}]  }
   0x1   :  { %3285 = sst [smem:[#allocation19_spill]] %s3274_s2 }
   0x2   :  { %3286 = sst [smem:[#allocation20_spill]] %s3275_s3 }
   0x3   :  { %3287 = sst [smem:[#allocation21_spill]] %s3276_s4 }
   0x4   :  { %11 = vsyncpa [#allocation3], 0 }
   0x5   :  { %13 = vsyncpa [#allocation3 + $0x1], 0 }
   0x6   :  { %14 = vsyncpa [#allocation6], 0 }
   0x7   :  { %16 = vsyncpa [#allocation6 + $0x1], 0 }
   0x8   :  { %17 = vsyncpa [#allocation9], 0 }
   0x9   :  { %18 = vsyncpa [#allocation4], 0 }
   0xa   :  { %20 = vsyncpa [#allocation4 + $0x1], 0  ;;  %s2805_s21 = smov 0   ;;  %s2807_s22 = smov 0  }
   0xb   :  { %s2809_s23 = smov 0   ;;  %s2811_s24 = smov 0  }
   0xc   :  { %s2813_s25 = smov 0   ;;  %s2815_s26 = smov 0  }
   0xd LB: > { %3288 = sst [smem:[#allocation17_spill]] %s2715_s21  ;;  %s2836_s27 = sadd.s32 4294967295, %s2735_s26   ;;  %s2735_s26 = sphi %s2815_s26, %s26_s26   ;;  %s2731_s25 = sphi %s2813_s25, %s3316_s25   ;;  %s2727_s24 = sphi %s2811_s24, %s3315_s24   ;;  %s2723_s23 = sphi %s2809_s23, %s3314_s23   ;;  %s2719_s22 = sphi %s2807_s22, %s3313_s22   ;;  %s2715_s21 = sphi %s2805_s21, %s3312_s21  }
   0xe   : > { %s2113_s28 = sadd.s32 4294967294, %s2735_s26   ;;  %p60_p0 = scmp.ne.s32.totalorder %s2719_s22, %s2715_s21 }
   0xf   : > { %p3279_p1 = scmp.eq.s32.totalorder %s2836_s27, 0  ;;  %p202_p3 = scmp.eq.s32.totalorder %s2113_s28, 1 }
  0x10   : > { %p2114_p5 = scmp.ge.s32.totalorder %s2735_s26, 1  ;;  %p209_p7 = scmp.lt.s32.totalorder %s2735_s26, 3 }
  0x11   : > { %p2845_p4 = por %p3279_p1, %p60_p0  ;;  %p2850_p6 = por %p202_p3, %p60_p0 }
  0x12   : > { %p2855_p8 = pnand %p2114_p5, %p209_p7  ;;  %s2737_s8 = smov [#allocation7]  }
  0x13   : > { %s3289_s29 = scalar_select %p2845_p4, 1, 0 }
  0x14   : > { %s3290_s30 = scalar_select %p2850_p6, 1, 0 }
  0x15   : > { %s3292_s7 = scalar_select %p2855_p8, 1, 0 }
  0x16   : > { %3291 = sst [smem:[#allocation18_spill]] %s3290_s30  ;;  %s221_s9 = sshll.u32 %s2737_s8, 4  ;;  %s2859_s9 = int_to_ptr.vmem [resolvable:$true] %s221_s9 }
  0x17   : > { %p2358_p9 = pneg %p2855_p8  ;;  %s2738_s11 = smov [#allocation8]  }
  0x18   : > { %s234_s12 = sshll.u32 %s2738_s11, 4  ;;  %s2739_s13 = smov [#allocation10]   ;;  %s2870_s12 = int_to_ptr.vmem [resolvable:$true] %s234_s12 }
  0x19   : > { %p2866_p11 = pnand %p2358_p9, %p3279_p1  ;;  %s2872_s14 = sshll.u32 %s2739_s13, 4  ;;  %s248_s14 = int_to_ptr.vmem [resolvable:$true] %s2872_s14 }
  0x1a   : > { %s3294_s2 = sld [smem:[#allocation19_spill]] }
  0x1b   : > { %p2882_p13 = pneg %p2866_p11 }
  0x20   : > { %s2497_s17 = scalar_lea.hbm %s3294_s2, 512 }
  0x21   : > { %p2498_p12 = scmp.ne.s32.totalorder %s3294_s2, %s2497_s17  ;;  %p2504_p5 = scmp.lt.u32.totalorder %s2497_s17, %s3294_s2 }
  0x23   : > { %p2500_p0 = pnand %p2882_p13, %p2498_p12 }
  0x25   : > { %p2501_p3 = pneg %p2500_p0 }
  0x27   : > { %p2506_p7 = pnand %p2504_p5, %p2501_p3 }
  0x29   : > { %2509 = shalt.err (!%p2506_p7)
}
  0x2a   : > { %s2510_s11 = scalar_lea.vmem %s2859_s9, 512  ;;  %p2518_p2 = scmp.lt.s32.totalorder %s2859_s9, %s2859_s9 }
  0x2b   : > { %p2511_p9 = scmp.ne.s32.totalorder %s2859_s9, %s2510_s11  ;;  %p2519_p6 = scmp.lt.s32.totalorder %s2510_s11, %s2510_s11 }
  0x2d   : > { %p2513_p10 = pnand %p2511_p9, %p2882_p13  ;;  %p2520_p12 = por %p2519_p6, %p2518_p2 }
  0x2f   : > { %p2514_p1 = pneg %p2513_p10 }
  0x31   : > { %p2521_p0 = pnand %p2520_p12, %p2514_p1 }
  0x33   : > { %2524 = shalt.err (!%p2521_p0)
}
  0x34   : > { %s2740_s13 = smov 128   ;;  %s2741_s15 = smov 8  }
  0x35   : > { %2361 = dma.hbm_to_vmem [thread:$0]  (!%p2866_p11), %s3294_s2, 512, %s2859_s9, [#allocation6], %s2740_s13, %s2740_s13, %s2741_s15  }
  0x36   : > { %s3296_s3 = sld [smem:[#allocation20_spill]] }
  0x3c   : > { %s2525_s28 = scalar_lea.hbm %s3296_s3, 512 }
  0x3d   : > { %p2526_p1 = scmp.ne.s32.totalorder %s3296_s3, %s2525_s28  ;;  %p2532_p10 = scmp.lt.u32.totalorder %s2525_s28, %s3296_s3 }
  0x3f   : > { %p2528_p2 = pnand %p2526_p1, %p2882_p13 }
  0x41   : > { %p2529_p6 = pneg %p2528_p2 }
  0x43   : > { %p2534_p3 = pnand %p2532_p10, %p2529_p6 }
  0x45   : > { %2537 = shalt.err (!%p2534_p3)
}
  0x46   : > { %s2538_s9 = scalar_lea.vmem %s2870_s12, 512  ;;  %p2546_p12 = scmp.lt.s32.totalorder %s2870_s12, %s2870_s12 }
  0x47   : > { %p2539_p5 = scmp.ne.s32.totalorder %s2870_s12, %s2538_s9  ;;  %p2547_p0 = scmp.lt.s32.totalorder %s2538_s9, %s2538_s9 }
  0x49   : > { %p2541_p7 = pnand %p2539_p5, %p2882_p13  ;;  %p2548_p1 = por %p2547_p0, %p2546_p12 }
  0x4b   : > { %p2542_p9 = pneg %p2541_p7 }
  0x4d   : > { %p2549_p2 = pnand %p2548_p1, %p2542_p9 }
  0x4f   : > { %2552 = shalt.err (!%p2549_p2)
}
  0x50   : > { %2364 = dma.hbm_to_vmem [thread:$0]  (!%p2866_p11), %s3296_s3, 512, %s2870_s12, [#allocation9], %s2740_s13, %s2740_s13, %s2741_s15  }
  0x51   : > { %s3297_s4 = sld [smem:[#allocation21_spill]] }
  0x57   : > { %s2553_s18 = scalar_lea.hbm %s3297_s4, 512 }
  0x58   : > { %p2554_p6 = scmp.ne.s32.totalorder %s3297_s4, %s2553_s18  ;;  %p2560_p5 = scmp.lt.u32.totalorder %s2553_s18, %s3297_s4 }
  0x5a   : > { %p2556_p10 = pnand %p2554_p6, %p2882_p13 }
  0x5c   : > { %p2557_p3 = pneg %p2556_p10 }
  0x5e   : > { %p2562_p7 = pnand %p2560_p5, %p2557_p3 }
  0x60   : > { %2565 = shalt.err (!%p2562_p7)
}
  0x61   : > { %s2566_s9 = scalar_lea.vmem %s248_s14, 512  ;;  %p2574_p1 = scmp.lt.s32.totalorder %s248_s14, %s248_s14 }
  0x62   : > { %p2567_p9 = scmp.ne.s32.totalorder %s248_s14, %s2566_s9  ;;  %p2575_p2 = scmp.lt.s32.totalorder %s2566_s9, %s2566_s9 }
  0x64   : > { %p2569_p12 = pnand %p2567_p9, %p2882_p13  ;;  %p2576_p4 = por %p2575_p2, %p2574_p1 }
  0x66   : > { %p2570_p0 = pneg %p2569_p12 }
  0x68   : > { %p2577_p8 = pnand %p2576_p4, %p2570_p0 }
  0x6a   : > { %2580 = shalt.err (!%p2577_p8)
}
  0x6b   : > { %2367 = dma.hbm_to_vmem [thread:$0]  (!%p2866_p11), %s3297_s4, 512, %s248_s14, [#allocation9], %s2740_s13, %s2740_s13, %s2741_s15  }
  0x6c   : > { %s47_s20 = sadd.s32 1, %s2723_s23  ;;  %s38_s10 = sadd.s32 1, %s2731_s25 }
  0x6d   : > { %p54_p4 = scmp.ne.s32.totalorder %s2723_s23, %s2719_s22  ;;  %p40_p8 = scmp.ge.s32.totalorder %s38_s10, 2 }
  0x6e   : > { %p55_p13 = scmp.eq.s32.totalorder %s2735_s26, 0  ;;  %p3298_p6 = scmp.eq.s32.totalorder %s2836_s27, 1 }
  0x6f   : > { %p2382_p3 = scmp.lt.s32.totalorder %s2735_s26, 2  ;;  %s3318_s10 = smov (%p40_p8, %s38_s10), 0 }
  0x70   : > { %p2961_p10 = por %p3298_p6, %p54_p4  ;;  %p56_p5 = por %p55_p13, %p54_p4 }
  0x71   : > { %s264_s16 = sand.u32 1, %s2723_s23   ;;  %s42_s17 = ssub.s32 %s2731_s25, %s3318_s10 }
  0x72   : > { %s3299_s30 = scalar_select %p2961_p10, 1, 0 }
  0x73   : > { %p45_p11 = scmp.eq.s32.totalorder %s42_s17, 0  ;;  %s2971_s14 = sshll.u32 %s264_s16, 3 }
  0x74   : > { %s2120_s13 = sshll.u32 %s2731_s25, 7  ;;  %s268_s8 = scalar_lea.vmem [#allocation2], %s2971_s14 }
  0x75   : > { %s2975_s15 = scalar_select %p45_p11, %s2723_s23, %s47_s20  }
  0x76   : > { %s2980_s28 = scalar_lea.hbm %s3272_s0, %s2120_s13  ;;  %s276_s11 = sshll.u32 %s268_s8, 4  ;;  %s2983_s11 = int_to_ptr.vmem [resolvable:$true] %s276_s11 }
  0x77   : > { %p2987_p7 = pnand %p2382_p3, %p56_p5  ;;  %s2994_s20 = scalar_lea.hbm %s3273_s1, %s2120_s13 }
  0x78   : > { %s283_s17 = sand.u32 1, %s2735_s26   ;;  %s265_s18 = scalar_lea.sflag [#allocation3], %s264_s16 }
  0x79   : > { %s2581_s19 = scalar_lea.hbm %s2980_s28, 128  ;;  %p2583_p12 = pneg %p2987_p7 }
  0x7a   : > { %p2582_p9 = scmp.ne.s32.totalorder %s2980_s28, %s2581_s19  ;;  %s2586_s3 = scalar_lea.hbm %s3272_s0, 256 }
  0x7b   : > { %p2587_p2 = scmp.lt.u32.totalorder %s2980_s28, %s3272_s0  ;;  %p2588_p4 = scmp.lt.u32.totalorder %s2586_s3, %s2581_s19 }
  0x7c   : > { %p2584_p0 = pnand %p2583_p12, %p2582_p9  ;;  %p2590_p13 = scmp.lt.u32.totalorder %s2581_s19, %s2980_s28 }
  0x7d   : > { %p2589_p8 = por %p2588_p4, %p2587_p2 }
  0x7e   : > { %p2585_p1 = pneg %p2584_p0 }
  0x7f   : > { %p2591_p6 = por %p2590_p13, %p2589_p8 }
  0x81   : > { %p2592_p3 = pnand %p2591_p6, %p2585_p1 }
  0x83   : > { %2595 = shalt.err (!%p2592_p3)
}
  0x84   : > { %s2596_s16 = scalar_lea.vmem %s2983_s11, 128  ;;  %s2742_s2 = smov [#allocation2]  }
  0x85   : > { %p2597_p5 = scmp.ne.s32.totalorder %s2983_s11, %s2596_s16  ;;  %s2601_s13 = sshll.u32 %s2742_s2, 4  ;;  %s2602_s13 = int_to_ptr.vmem [resolvable:$false] %s2601_s13 }
  0x86   : > { %s2603_s4 = scalar_lea.vmem %s2602_s13, 256  ;;  %p2604_p0 = scmp.lt.s32.totalorder %s2983_s11, %s2602_s13 }
  0x87   : > { %p2599_p11 = pnand %p2597_p5, %p2583_p12  ;;  %p2605_p2 = scmp.lt.s32.totalorder %s2603_s4, %s2596_s16 }
  0x89   : > { %p2600_p9 = pneg %p2599_p11  ;;  %p2606_p4 = por %p2605_p2, %p2604_p0 }
  0x8b   : > { %p2607_p8 = pnand %p2606_p4, %p2600_p9 }
  0x8d   : > { %2610 = shalt.err (!%p2607_p8)
}
  0x8e   : > { %2371 = dma.hbm_to_vmem [thread:$0]  (!%p2987_p7), %s2980_s28, 128, %s2983_s11, %s265_s18  }
  0x8f   : > { %s287_s3 = scalar_lea.vmem [#allocation5], %s2971_s14  ;;  %s284_s19 = scalar_lea.sflag [#allocation6], %s283_s17 }
  0x90   : > { %s294_s21 = sshll.u32 %s287_s3, 4  ;;  %s2611_s8 = scalar_lea.hbm %s2994_s20, 128  ;;  %s295_s21 = int_to_ptr.vmem [resolvable:$true] %s294_s21 }
  0x91   : > { %p2612_p1 = scmp.ne.s32.totalorder %s2994_s20, %s2611_s8  ;;  %s2616_s2 = scalar_lea.hbm %s3273_s1, 256 }
  0x92   : > { %p2617_p3 = scmp.lt.u32.totalorder %s2994_s20, %s3273_s1  ;;  %p2618_p5 = scmp.lt.u32.totalorder %s2616_s2, %s2611_s8 }
  0x93   : > { %p2614_p13 = pnand %p2612_p1, %p2583_p12  ;;  %p2620_p9 = scmp.lt.u32.totalorder %s2611_s8, %s2994_s20 }
  0x94   : > { %p2619_p11 = por %p2618_p5, %p2617_p3 }
  0x95   : > { %p2615_p6 = pneg %p2614_p13 }
  0x96   : > { %p2621_p0 = por %p2620_p9, %p2619_p11 }
  0x98   : > { %p2622_p2 = pnand %p2621_p0, %p2615_p6 }
  0x9a   : > { %2625 = shalt.err (!%p2622_p2)
}
  0x9b   : > { %s2626_s14 = scalar_lea.vmem %s295_s21, 128  ;;  %s2743_s28 = smov [#allocation5]  }
  0x9c   : > { %p2627_p4 = scmp.ne.s32.totalorder %s295_s21, %s2626_s14  ;;  %s2631_s11 = sshll.u32 %s2743_s28, 4  ;;  %s2632_s11 = int_to_ptr.vmem [resolvable:$false] %s2631_s11 }
  0x9d   : > { %s2633_s17 = scalar_lea.vmem %s2632_s11, 256  ;;  %p2634_p13 = scmp.lt.s32.totalorder %s295_s21, %s2632_s11 }
  0x9e   : > { %p2629_p8 = pnand %p2627_p4, %p2583_p12  ;;  %p2635_p10 = scmp.lt.s32.totalorder %s2633_s17, %s2626_s14 }
  0xa0   : > { %p2630_p1 = pneg %p2629_p8  ;;  %p2636_p3 = por %p2635_p10, %p2634_p13 }
  0xa2   : > { %p2637_p5 = pnand %p2636_p3, %p2630_p1 }
  0xa4   : > { %2640 = shalt.err (!%p2637_p5)
}
  0xa5   : > { %2374 = dma.hbm_to_vmem [thread:$0]  (!%p2987_p7), %s2994_s20, 128, %s295_s21, %s284_s19  }
  0xa6   : > { %p3301_p6 = scmp.ne.s32.totalorder %s3292_s7, 0 }
  0xa7   : > { %s3047_s18 = sand.u32 (!%p3301_p6), 1, %s2719_s22   ;;  %p3302_p10 = scmp.ne.s32.totalorder (!%p3301_p6), %s3289_s29, 0 }
  0xa8   : > { %303 = sbr.rel (%p3301_p6) target bundleno = 1524 (0x5f4), region = 44  ;;  %s3050_s3 = sshll.u32 (!%p3301_p6), %s3047_s18, 3 }
  0xa9   : > { %s306_s8 = scalar_lea.sflag (!%p3301_p6), [#allocation3], %s3047_s18  ;;  %s309_s12 = scalar_lea.vmem (!%p3301_p6), [#allocation2], %s3050_s3 }
  0xaf   : > { %2694 = dma.done.wait (%p3302_p10), %s306_s8, 128  }
  0xb0   : > { %2696 = vsyncadd (%p3302_p10), %s306_s8, 4294967168  ;;  %s314_s7 = sand.u32 1, %s2836_s27   ;;  %s318_s20 = scalar_lea.vmem [#allocation5], %s3050_s3 }
  0xb1   : > { %s315_s9 = scalar_lea.sflag [#allocation6], %s314_s7 }
  0xb2   : > { %2698 = dma.done.wait (%p3302_p10), %s315_s9, 128  }
  0xb3   : > { %2700 = vsyncadd (%p3302_p10), %s315_s9, 4294967168  ;;  %p3303_p7 = scmp.eq.s32.totalorder %s2836_s27, 0 }
  0xb5   : > { %2702 = dma.done.wait (%p3303_p7), [#allocation6], 512   ;;  %p3304_p12 = pmov %p3303_p7 }
  0xb6   : > { %p3305_p11 = pmov %p3303_p7 }
  0xb7   : > { %2704 = vsyncadd (%p3304_p12), [#allocation6], 4294966784 }
  0xb8   : > { %2706 = dma.done.wait (%p3305_p11), [#allocation9], 1024   ;;  %p3306_p9 = pmov %p3303_p7 }
  0xb9   : > { %v2744_v0 = vmov 0.0|0.0   ;;  %vm2745_vm0 = vmmov 0   ;;  %v2746_v1 = vmov 0.0   ;;  %v444_v2 = vld [vmem:[#allocation8] sm:$0xff]  ;;  %v445_v3 = vld [vmem:[#allocation8 + $0x8] sm:$0xff]  ;;  %v446_v7 = vld [vmem:[#allocation8 + $0x10] sm:$0xff] }
  0xba   : > { %2708 = vsyncadd (%p3306_p9), [#allocation9], 4294966272  ;;  %2328 = vmatprep.subr.bf16.mxu1 %v2744_v0  ;;  %2322 = vmatprep.subr.bf16.mxu0 %v2744_v0  ;;  %v366_v4 = vld [vmem:[#allocation7] sm:$0xff]  ;;  %v2329_v5 = vpack.c.bf16 %v445_v3, %v444_v2  ;;  %v367_v6 = vld [vmem:[#allocation7 + $0x8] sm:$0xff]  ;;  %vm370_vm1 = vcmask 261120   ;;  %vm521_vm2 = vcmask 31744  }
  0xbb   : > { %2228 = vmatprep.mubr.msk.f32.mxu1 %vm2745_vm0, %v2746_v1  ;;  %2217 = vmatprep.mubr.msk.f32.mxu0 %vm2745_vm0, %v2746_v1  ;;  %v447_v8 = vld [vmem:[#allocation8 + $0x18] sm:$0xff]  ;;  %v2323_v9 = vpack.c.bf16 %v367_v6, %v366_v4  ;;  %v368_v10 = vld [vmem:[#allocation7 + $0x10] sm:$0xff]  ;;  %v364_v15 = vld [vmem:[%s309_s12] sm:$0xff]  ;;  %s2747_s27 = smov 120   ;;  %s2748_s29 = smov 124   ;;  %vm598_vm3 = vcmask 64512  }
  0xbc   : > { %v369_v11 = vld [vmem:[#allocation7 + $0x18] sm:$0xff]  ;;  %2330 = vmatpush3.bf16.msra.mxu1 %v2329_v5  ;;  %v2332_v12 = vpack.c.bf16 %v447_v8, %v446_v7  ;;  %s2749_s21 = smov 116   ;;  %s2750_s19 = smov 112   ;;  %vm1871_vm4 = vcmask 97280   ;;  %vm1873_vm5 = vcmask 130048   ;;  %vm1875_vm6 = vcmask 162816  }
  0xbd   : > { %2324 = vmatpush3.bf16.msra.mxu0 %v2323_v9  ;;  %2331 = vmatprep.subr.bf16.mxu1 %v2744_v0  ;;  %v2326_v13 = vpack.c.bf16 %v369_v11, %v368_v10  ;;  %v365_v14 = vld [vmem:[%s318_s20] sm:$0xff]  ;;  %s2751_s16 = smov 108   ;;  %s2752_s2 = smov 104   ;;  %vm1877_vm7 = vcmask 195584   ;;  %vm1879_vm8 = vcmask 228352  }
  0xbe   : > { %2325 = vmatprep.subr.bf16.mxu0 %v2744_v0  ;;  %s2753_s13 = smov 100   ;;  %s2754_s4 = smov 92  }
  0xbf   : > { %s2755_s14 = smov 96   ;;  %s2756_s28 = smov 84  }
  0xc0   : > { %2333 = vmatpush3.bf16.msra.mxu1 %v2332_v12  ;;  %s2757_s11 = smov 88   ;;  %s2758_s17 = smov 76  }
  0xc1   : > { %2327 = vmatpush3.bf16.msra.mxu0 %v2326_v13  ;;  %2231 = vmatprep.subr.mxu1 %v2746_v1  ;;  %s2759_s8 = smov 80   ;;  %s2760_s12 = smov 72  }
  0xc2   : > { %2241 = vmatprep.subr.mxu0 %v2746_v1  ;;  %s2761_s7 = smov 68   ;;  %s2762_s9 = smov 4  }
  0xc3   : > { %2229 = vmatmul.mubr.msk.f32.vlgmr.msra.gmra.mrb[0].mxu1 %vm370_vm1, %v365_v14  ;;  %s2763_s20 = smov 8   ;;  %p3307_p2 = scmp.ne.s32.totalorder %s3299_s30, 0 }
  0xc4   : > { %2218 = vmatmul.mubr.msk.f32.vlgmr.msra.gmra.mrb[0].mxu0 %vm370_vm1, %v364_v15  ;;  %2233 = vmatprep.mubr.msk.f32.mxu1 %vm2745_vm0, %v2746_v1 }
  0xc5   : > { %2243 = vmatprep.mubr.msk.f32.mxu0 %vm2745_vm0, %v2746_v1 }
 0x196   : > { %v3092_v16 = vpop.f32.mrb[0].mxu1 }
 0x197   : > { %853 = vrot.lane.b32.xlu1 %v3092_v16, %s2747_s27  ;;  %688 = vrot.lane.b32.xlu0 %v3092_v16, %s2748_s29  ;;  %v2230_v17 = vpop.f32.mrb[1].mxu1  ;;  %v440_v18 = vpop.f32.mrb[0].mxu0 }
 0x198   : > { %2232 = vmatpush3.xpose.msk.msra.mxu1 %vm521_vm2, %v3092_v16  ;;  %v2219_v19 = vpop.f32.mrb[1].mxu0 }
 0x199   : > { %2236 = vmatprep.subr.mxu1 %v2746_v1 }
 0x19b   : > { %2234 = vmatmul.mubr.msk.f32.vlgmr.msra.gmra.mrb[2].mxu1 %vm521_vm2, %v440_v18  ;;  %851 = vrot.lane.b32.xlu1 %v440_v18, %s2747_s27  ;;  %s2764_s27 = smov 12  }
 0x19c   : > { %686 = vrot.lane.b32.xlu0 %v440_v18, %s2748_s29  ;;  %2238 = vmatprep.mubr.msk.f32.mxu1 %vm2745_vm0, %v2746_v1  ;;  %s2765_s29 = smov 16  }
 0x19f   : > { %1016 = vrot.lane.b32.xlu1 %v440_v18, %s2749_s21 }
 0x1a0   : > { %1018 = vrot.lane.b32.xlu0 %v3092_v16, %s2749_s21  ;;  %s2766_s21 = smov 20  }
 0x1a3   : > { %1181 = vrot.lane.b32.xlu1 %v440_v18, %s2750_s19 }
 0x1a4   : > { %1183 = vrot.lane.b32.xlu0 %v3092_v16, %s2750_s19  ;;  %s2767_s19 = smov 24  }
 0x1a7   : > { %1346 = vrot.lane.b32.xlu1 %v440_v18, %s2751_s16 }
 0x1a8   : > { %1348 = vrot.lane.b32.xlu0 %v3092_v16, %s2751_s16  ;;  %s2768_s16 = smov 28  }
 0x1ab   : > { %1511 = vrot.lane.b32.xlu1 %v440_v18, %s2752_s2 }
 0x1ac   : > { %1513 = vrot.lane.b32.xlu0 %v3092_v16, %s2752_s2 }
 0x1af   : > { %1676 = vrot.lane.b32.xlu1 %v440_v18, %s2753_s13 }
 0x1b0   : > { %1678 = vrot.lane.b32.xlu0 %v3092_v16, %s2753_s13 }
 0x1b3   : > { %773 = vrot.lane.b32.xlu1 %v3092_v16, %s2754_s4  ;;  %s2159_s4 = sshll.u32 %s2727_s24, 7  ;;  %s2769_s24 = smov [#allocation11]  }
 0x1b4   : > { %608 = vrot.lane.b32.xlu0 %v3092_v16, %s2755_s14  ;;  %s363_s14 = scalar_lea.vmem [#allocation11], %s3050_s3  ;;  %s2645_s3 = sshll.u32 %s2769_s24, 4  ;;  %s2646_s3 = int_to_ptr.vmem [resolvable:$false] %s2645_s3 }
 0x1b7   : > { %1103 = vrot.lane.b32.xlu1 %v3092_v16, %s2756_s28  ;;  %s1981_s28 = sshll.u32 %s363_s14, 4  ;;  %s3224_s28 = int_to_ptr.vmem [resolvable:$true] %s1981_s28 }
 0x1b8   : > { %p2648_p1 = scmp.lt.s32.totalorder %s3224_s28, %s2646_s3 }
 0x209   : > { %v854_v20 = vpop.permute.xlu1 %853  ;;  %v689_v21 = vpop.permute.xlu0 %688 }
 0x20a   : > { %2242 = vmatpush3.xpose.msk.msra.mxu0 %vm521_vm2, %v689_v21 }
 0x20b   : > { %2251 = vmatprep.subr.mxu0 %v2746_v1 }
 0x20d   : > { %v852_v22 = vpop.permute.xlu1 %851 }
 0x20e   : > { %v687_v23 = vpop.permute.xlu0 %686 }
 0x20f   : > { %2244 = vmatmul.mubr.msk.f32.vlgmr.msra.gmra.mrb[2].mxu0 %vm521_vm2, %v687_v23 }
 0x210   : > { %2252 = vmatpush3.xpose.msk.msra.mxu0 %vm521_vm2, %v854_v20  ;;  %2253 = vmatprep.mubr.msk.f32.mxu0 %vm2745_vm0, %v2746_v1 }
 0x211   : > { %v1017_v24 = vpop.permute.xlu1 %1016  ;;  %2261 = vmatprep.subr.mxu0 %v2746_v1 }
 0x212   : > { %v1019_v25 = vpop.permute.xlu0 %1018 }
 0x213   : > { %2254 = vmatmul.mubr.msk.f32.vlgmr.msra.gmra.mrb[4].mxu0 %vm521_vm2, %v852_v22 }
 0x214   : > { %2262 = vmatpush3.xpose.msk.msra.mxu0 %vm521_vm2, %v1019_v25  ;;  %2263 = vmatprep.mubr.msk.f32.mxu0 %vm2745_vm0, %v2746_v1 }
 0x215   : > { %v1182_v26 = vpop.permute.xlu1 %1181  ;;  %2271 = vmatprep.subr.mxu0 %v2746_v1 }
 0x216   : > { %v1184_v27 = vpop.permute.xlu0 %1183 }
 0x217   : > { %2264 = vmatmul.mubr.msk.f32.vlgmr.msra.gmra.mrb[6].mxu0 %vm521_vm2, %v1017_v24 }
 0x218   : > { %2272 = vmatpush3.xpose.msk.msra.mxu0 %vm521_vm2, %v1184_v27  ;;  %2273 = vmatprep.mubr.msk.f32.mxu0 %vm2745_vm0, %v2746_v1 }
 0x219   : > { %2281 = vmatprep.subr.mxu0 %v2746_v1  ;;  %v1347_v28 = vpop.permute.xlu1 %1346 }
 0x21a   : > { %v1349_v29 = vpop.permute.xlu0 %1348 }
 0x21b   : > { %2274 = vmatmul.mubr.msk.f32.vlgmr.msra.gmra.mrb[8].mxu0 %vm521_vm2, %v1182_v26 }
 0x21c   : > { %2282 = vmatpush3.xpose.msk.msra.mxu0 %vm521_vm2, %v1349_v29  ;;  %2283 = vmatprep.mubr.msk.f32.mxu0 %vm2745_vm0, %v2746_v1 }
 0x21d   : > { %2291 = vmatprep.subr.mxu0 %v2746_v1  ;;  %v1512_v31 = vpop.permute.xlu1 %1511 }
 0x21e   : > { %v1514_v30 = vpop.permute.xlu0 %1513 }
 0x21f   : > { %2284 = vmatmul.mubr.msk.f32.vlgmr.msra.gmra.mrb[10].mxu0 %vm521_vm2, %v1347_v28 }
 0x220   : > { %2292 = vmatpush3.xpose.msk.msra.mxu0 %vm521_vm2, %v1514_v30  ;;  %2293 = vmatprep.mubr.msk.f32.mxu0 %vm2745_vm0, %v2746_v1 }
 0x221   : > { %2301 = vmatprep.subr.mxu0 %v2746_v1  ;;  %v1677_v33 = vpop.permute.xlu1 %1676 }
 0x222   : > { %v1679_v32 = vpop.permute.xlu0 %1678 }
 0x223   : > { %2294 = vmatmul.mubr.msk.f32.vlgmr.msra.gmra.mrb[12].mxu0 %vm521_vm2, %v1512_v31 }
 0x224   : > { %2302 = vmatpush3.xpose.msk.msra.mxu0 %vm521_vm2, %v1679_v32  ;;  %2303 = vmatprep.mubr.msk.f32.mxu0 %vm2745_vm0, %v2746_v1 }
 0x225   : > { %2334 = vmatprep.subr.bf16.mxu0 %v2744_v0  ;;  %v774_v61 = vpop.permute.xlu1 %773 }
 0x226   : > { %v609_v34 = vpop.permute.xlu0 %608 }
 0x227   : > { %2237 = vmatpush3.msra.mxu1 %v609_v34  ;;  %2304 = vmatmul.mubr.msk.f32.vlgmr.msra.gmra.mrb[14].mxu0 %vm521_vm2, %v1677_v33 }
 0x228   : > { %2246 = vmatprep.subr.mxu1 %v2746_v1  ;;  %2319 = vmatprep.mubr.msk.f32.mxu0 %vm2745_vm0, %v2746_v1 }
 0x229   : > { %v1104_v2 = vpop.permute.xlu1 %1103 }
 0x26e   : > { %v594_v35 = vpop.f32.mrb[2].mxu1 }
 0x26f   : > { %v2235_v36 = vpop.f32.mrb[3].mxu1  ;;  %v599_v37 = vsel %vm598_vm3, %v594_v35, -inf }
 0x270   : > { %600 = vmax.xlane.f32.xlu0 %v599_v37 }
 0x286   : > { %938 = vrot.lane.b32.xlu0 %v3092_v16, %s2757_s11 }
 0x2e2   : > { %v760_v38 = vpop.f32.mrb[2].mxu0 }
 0x2e3   : > { %v2245_v39 = vpop.f32.mrb[3].mxu0  ;;  %v764_v40 = vsel %vm598_vm3, %v760_v38, -inf }
 0x2e4   : > { %765 = vmax.xlane.f32.xlu1 %v764_v40 }
 0x2e6   : > { %v925_v41 = vpop.f32.mrb[4].mxu0 }
 0x2e7   : > { %v2255_v42 = vpop.f32.mrb[5].mxu0  ;;  %v929_v43 = vsel %vm598_vm3, %v925_v41, -inf }
 0x2e8   : > { %930 = vmax.xlane.f32.xlu0 %v929_v43 }
 0x2ea   : > { %v1090_v44 = vpop.f32.mrb[6].mxu0 }
 0x2eb   : > { %v2265_v45 = vpop.f32.mrb[7].mxu0  ;;  %v1094_v46 = vsel %vm598_vm3, %v1090_v44, -inf }
 0x2ec   : > { %1095 = vmax.xlane.f32.xlu0 %v1094_v46 }
 0x2ee   : > { %v1255_v47 = vpop.f32.mrb[8].mxu0 }
 0x2ef   : > { %v2275_v48 = vpop.f32.mrb[9].mxu0  ;;  %v1259_v49 = vsel %vm598_vm3, %v1255_v47, -inf }
 0x2f0   : > { %1260 = vmax.xlane.f32.xlu1 %v1259_v49 }
 0x2f2   : > { %v1420_v50 = vpop.f32.mrb[10].mxu0 }
 0x2f3   : > { %v2285_v51 = vpop.f32.mrb[11].mxu0  ;;  %v1424_v52 = vsel %vm598_vm3, %v1420_v50, -inf }
 0x2f4   : > { %1425 = vmax.xlane.f32.xlu0 %v1424_v52 }
 0x2f6   : > { %v3153_v53 = vpop.f32.mrb[12].mxu0 }
 0x2f7   : > { %v2295_v54 = vpop.f32.mrb[13].mxu0  ;;  %v1589_v62 = vsel %vm598_vm3, %v3153_v53, -inf }
 0x2fa   : > { %v3155_v55 = vpop.f32.mrb[14].mxu0 }
 0x2fb   : > { %v2305_v56 = vpop.f32.mrb[15].mxu0  ;;  %v1754_v63 = vsel %vm598_vm3, %v3155_v55, -inf }
 0x2fd   : > { %v601_v57 = vpop.xlane.xlu0 %600 }
 0x2fe   : > { %v602_v58 = vsub.f32 %v594_v35, %v601_v57 }
 0x300   : > { %v603_v59 = vmul.f32 1.442695, %v602_v58  ;;  %v1881_v58 = vld [vmem:[#allocation10] sm:$0xff] }
 0x301   : > { %1433 = vrot.lane.b32.xlu1 %v3092_v16, %s2758_s17  ;;  %v939_v3 = vpop.permute.xlu0 %938 }
 0x302   : > { %2465 = vpow2.f32 %v603_v59  ;;  %v1882_v59 = vld [vmem:[#allocation10 + $0x8] sm:$0xff] }
 0x30a   : > { %1268 = vrot.lane.b32.xlu0 %v3092_v16, %s2759_s8  ;;  %s3222_s8 = scalar_lea.hbm %s3278_s6, %s2159_s4 }
 0x30c   : > { %v3159_v60 = vpop.eup %2465 }
 0x30d   : > { %2239 = vmatmul.mubr.msk.f32.vlgmr.msra.gmra.mrb[4].mxu1 %vm598_vm3, %v3159_v60  ;;  %v605_v42 = vsel %vm598_vm3, %v3159_v60, 0.0  ;;  %v2335_v60 = vpack.c.bf16 %v1882_v59, %v1881_v58 }
 0x30e   : > { %2247 = vmatpush3.msra.mxu1 %v774_v61  ;;  %1598 = vrot.lane.b32.xlu0 %v3092_v16, %s2760_s12  ;;  %s1967_s12 = scalar_lea.sflag [#allocation4], %s3047_s18 }
 0x30f   : > { %2248 = vmatprep.mubr.msk.f32.mxu1 %vm2745_vm0, %v2746_v1  ;;  %2256 = vmatprep.subr.mxu1 %v2746_v1 }
 0x310   : > { %2336 = vmatpush3.bf16.msra.mxu0 %v2335_v60 }
 0x311   : > { %2337 = vmatprep.subr.bf16.mxu0 %v2744_v0 }
 0x325   : > { %1590 = vmax.xlane.f32.xlu1 %v1589_v62 }
 0x329   : > { %1755 = vmax.xlane.f32.xlu1 %v1754_v63 }
 0x33a   : > { %1763 = vrot.lane.b32.xlu1 %v3092_v16, %s2761_s7  ;;  %s2641_s7 = scalar_lea.vmem %s3224_s28, 128 }
 0x33b   : > { %p2642_p0 = scmp.ne.s32.totalorder %s3224_s28, %s2641_s7 }
 0x33d   : > { %p2643_p4 = pnand %p2642_p0, %p3307_p2 }
 0x33f   : > { %p2644_p8 = pneg %p2643_p4 }
 0x371   : > { %v766_v4 = vpop.xlane.xlu1 %765 }
 0x372   : > { %v767_v5 = vsub.f32 %v760_v38, %v766_v4 }
 0x374   : > { %v768_v6 = vmul.f32 1.442695, %v767_v5 }
 0x375   : > { %v931_v7 = vpop.xlane.xlu0 %930 }
 0x376   : > { %2467 = vpow2.f32 %v768_v6  ;;  %v932_v8 = vsub.f32 %v925_v41, %v931_v7 }
 0x378   : > { %v933_v9 = vmul.f32 1.442695, %v932_v8 }
 0x379   : > { %v1096_v10 = vpop.xlane.xlu0 %1095 }
 0x37a   : > { %2469 = vpow2.f32 %v933_v9  ;;  %v1097_v11 = vsub.f32 %v1090_v44, %v1096_v10 }
 0x37c   : > { %v1098_v12 = vmul.f32 1.442695, %v1097_v11 }
 0x37d   : > { %v1261_v13 = vpop.xlane.xlu1 %1260 }
 0x37e   : > { %2471 = vpow2.f32 %v1098_v12  ;;  %v1262_v14 = vsub.f32 %v1255_v47, %v1261_v13  ;;  %v1883_v12 = vld [vmem:[#allocation10 + $0x10] sm:$0xff]  ;;  %v1884_v13 = vld [vmem:[#allocation10 + $0x18] sm:$0xff] }
 0x37f   : > { %v2338_v0 = vpack.c.bf16 %v1884_v13, %v1883_v12 }
 0x380   : > { %v2468_v15 = vpop.eup %2467  ;;  %v1263_v17 = vmul.f32 1.442695, %v1262_v14 }
 0x381   : > { %2249 = vmatmul.mubr.msk.f32.vlgmr.msra.gmra.mrb[6].mxu1 %vm598_vm3, %v2468_v15  ;;  %v1426_v16 = vpop.xlane.xlu0 %1425  ;;  %v770_v18 = vsel %vm598_vm3, %v2468_v15, 0.0  ;;  %v1434_v27 = vpop.permute.xlu1 %1433  ;;  %2339 = vmatpush3.bf16.msra.mxu0 %v2338_v0 }
 0x382   : > { %2473 = vpow2.f32 %v1263_v17  ;;  %2257 = vmatpush3.msra.mxu1 %v939_v3  ;;  %v1427_v19 = vsub.f32 %v1420_v50, %v1426_v16  ;;  %771 = vadd.xlane.f32.xlu0 %v770_v18 }
 0x383   : > { %2258 = vmatprep.mubr.msk.f32.mxu1 %vm2745_vm0, %v2746_v1  ;;  %2266 = vmatprep.subr.mxu1 %v2746_v1 }
 0x384   : > { %v2470_v20 = vpop.eup %2469  ;;  %v1428_v21 = vmul.f32 1.442695, %v1427_v19 }
 0x385   : > { %2259 = vmatmul.mubr.msk.f32.vlgmr.msra.gmra.mrb[8].mxu1 %vm598_vm3, %v2470_v20  ;;  %v935_v22 = vsel %vm598_vm3, %v2470_v20, 0.0  ;;  %v1269_v24 = vpop.permute.xlu0 %1268 }
 0x386   : > { %2475 = vpow2.f32 %v1428_v21  ;;  %2267 = vmatpush3.msra.mxu1 %v1104_v2  ;;  %936 = vadd.xlane.f32.xlu1 %v935_v22 }
 0x387   : > { %2268 = vmatprep.mubr.msk.f32.mxu1 %vm2745_vm0, %v2746_v1  ;;  %2276 = vmatprep.subr.mxu1 %v2746_v1 }
 0x388   : > { %v2472_v23 = vpop.eup %2471 }
 0x389   : > { %2269 = vmatmul.mubr.msk.f32.vlgmr.msra.gmra.mrb[10].mxu1 %vm598_vm3, %v2472_v23  ;;  %v1100_v25 = vsel %vm598_vm3, %v2472_v23, 0.0  ;;  %v1599_v30 = vpop.permute.xlu0 %1598 }
 0x38a   : > { %2277 = vmatpush3.msra.mxu1 %v1269_v24  ;;  %1101 = vadd.xlane.f32.xlu0 %v1100_v25 }
 0x38b   : > { %2278 = vmatprep.mubr.msk.f32.mxu1 %vm2745_vm0, %v2746_v1  ;;  %2286 = vmatprep.subr.mxu1 %v2746_v1 }
 0x38c   : > { %v2474_v26 = vpop.eup %2473 }
 0x38d   : > { %2279 = vmatmul.mubr.msk.f32.vlgmr.msra.gmra.mrb[12].mxu1 %vm598_vm3, %v2474_v26  ;;  %v1265_v28 = vsel %vm598_vm3, %v2474_v26, 0.0 }
 0x38e   : > { %2287 = vmatpush3.msra.mxu1 %v1434_v27  ;;  %1266 = vadd.xlane.f32.xlu0 %v1265_v28 }
 0x38f   : > { %2288 = vmatprep.mubr.msk.f32.mxu1 %vm2745_vm0, %v2746_v1  ;;  %2296 = vmatprep.subr.mxu1 %v2746_v1 }
 0x390   : > { %v2476_v29 = vpop.eup %2475 }
 0x391   : > { %2289 = vmatmul.mubr.msk.f32.vlgmr.msra.gmra.mrb[14].mxu1 %vm598_vm3, %v2476_v29  ;;  %v1430_v31 = vsel %vm598_vm3, %v2476_v29, 0.0 }
 0x392   : > { %2297 = vmatpush3.msra.mxu1 %v1599_v30  ;;  %1431 = vadd.xlane.f32.xlu1 %v1430_v31 }
 0x393   : > { %2298 = vmatprep.mubr.msk.f32.mxu1 %vm2745_vm0, %v2746_v1  ;;  %2306 = vmatprep.subr.mxu1 %v2746_v1 }
 0x3b2   : > { %v1591_v32 = vpop.xlane.xlu1 %1590 }
 0x3b3   : > { %v1592_v33 = vsub.f32 %v3153_v53, %v1591_v32 }
 0x3b5   : > { %v1593_v34 = vmul.f32 1.442695, %v1592_v33 }
 0x3b6   : > { %v1756_v35 = vpop.xlane.xlu1 %1755 }
 0x3b7   : > { %2477 = vpow2.f32 %v1593_v34  ;;  %v1757_v36 = vsub.f32 %v3155_v55, %v1756_v35 }
 0x3b9   : > { %v1758_v37 = vmul.f32 1.442695, %v1757_v36 }
 0x3ba   : > { %v1764_v39 = vpop.permute.xlu1 %1763 }
 0x3bb   : > { %2479 = vpow2.f32 %v1758_v37 }
 0x3c1   : > { %v2478_v38 = vpop.eup %2477 }
 0x3c2   : > { %2299 = vmatmul.mubr.msk.f32.vlgmr.msra.gmra.mrb[16].mxu1 %vm598_vm3, %v2478_v38  ;;  %v1595_v40 = vsel %vm598_vm3, %v2478_v38, 0.0 }
 0x3c3   : > { %2307 = vmatpush3.msra.mxu1 %v1764_v39  ;;  %1596 = vadd.xlane.f32.xlu0 %v1595_v40  ;;  %v2156_v40 = vld [vmem:[%s3277_s5] ss:$0 sm:$0xff] }
 0x3c4   : > { %2308 = vmatprep.mubr.msk.f32.mxu1 %vm2745_vm0, %v2746_v1 }
 0x3c5   : > { %v2480_v41 = vpop.eup %2479 }
 0x3c6   : > { %2309 = vmatmul.mubr.msk.f32.vlgmr.msra.gmra.mrb[18].mxu1 %vm598_vm3, %v2480_v41  ;;  %v1760_v43 = vsel %vm598_vm3, %v2480_v41, 0.0 }
 0x3c7   : > { %606 = vadd.xlane.f32.xlu0 %v605_v42  ;;  %1761 = vadd.xlane.f32.xlu1 %v1760_v43 }
 0x3e0   : > { %v3207_v44 = vpop.f32.mrb[4].mxu1 }
 0x3e1   : > { %v2240_v45 = vpop.f32.mrb[5].mxu1 }
 0x40f   : > { %v772_v46 = vpop.xlane.xlu0 %771 }
 0x410   : > { %2481 = vrcp.f32 %v772_v46 }
 0x413   : > { %v937_v47 = vpop.xlane.xlu1 %936 }
 0x414   : > { %2483 = vrcp.f32 %v937_v47 }
 0x417   : > { %v1102_v48 = vpop.xlane.xlu0 %1101 }
 0x418   : > { %2485 = vrcp.f32 %v1102_v48 }
 0x41a   : > { %v2482_v49 = vpop.eup %2481 }
 0x41b   : > { %v1267_v1 = vpop.xlane.xlu0 %1266 }
 0x41c   : > { %2487 = vrcp.f32 %v1267_v1 }
 0x41e   : > { %v2484_v54 = vpop.eup %2483 }
 0x41f   : > { %v1432_v53 = vpop.xlane.xlu1 %1431 }
 0x420   : > { %2489 = vrcp.f32 %v1432_v53 }
 0x422   : > { %v2486_v61 = vpop.eup %2485 }
 0x426   : > { %v2488_v3 = vpop.eup %2487 }
 0x42a   : > { %v2490_v7 = vpop.eup %2489 }
 0x450   : > { %v1597_v11 = vpop.xlane.xlu0 %1596 }
 0x451   : > { %2491 = vrcp.f32 %v1597_v11 }
 0x454   : > { %v845_v50 = vpop.f32.mrb[6].mxu1  ;;  %v1762_v14 = vpop.xlane.xlu1 %1761 }
 0x455   : > { %v850_v51 = vmul.f32 %v2482_v49, %v845_v50  ;;  %v2250_v52 = vpop.f32.mrb[7].mxu1  ;;  %2493 = vrcp.f32 %v1762_v14  ;;  %v607_v23 = vpop.xlane.xlu0 %606 }
 0x456   : > { %2495 = vrcp.f32 %v607_v23 }
 0x457   : > { %1842 = vrot.lane.b32.xlu1 %v850_v51, %s2762_s9  ;;  %s2647_s9 = scalar_lea.vmem %s2646_s3, 256 }
 0x458   : > { %v1010_v55 = vpop.f32.mrb[8].mxu1  ;;  %p2649_p13 = scmp.lt.s32.totalorder %s2647_s9, %s2641_s7 }
 0x459   : > { %v1015_v56 = vmul.f32 %v2484_v54, %v1010_v55  ;;  %v2260_v57 = vpop.f32.mrb[9].mxu1 }
 0x45a   : > { %p2650_p3 = por %p2649_p13, %p2648_p1 }
 0x45b   : > { %1846 = vrot.lane.b32.xlu0 %v1015_v56, %s2763_s20  ;;  %v2492_v15 = vpop.eup %2491 }
 0x45c   : > { %v1175_v62 = vpop.f32.mrb[10].mxu1  ;;  %p2651_p5 = pnand %p2650_p3, %p2644_p8 }
 0x45d   : > { %v1180_v63 = vmul.f32 %v2486_v61, %v1175_v62  ;;  %v2270_v2 = vpop.f32.mrb[11].mxu1 }
 0x45f   : > { %1850 = vrot.lane.b32.xlu1 %v1180_v63, %s2764_s27  ;;  %v2494_v19 = vpop.eup %2493 }
 0x460   : > { %v1340_v4 = vpop.f32.mrb[12].mxu1  ;;  %v2496_v26 = vpop.eup %2495 }
 0x461   : > { %v1345_v5 = vmul.f32 %v2488_v3, %v1340_v4  ;;  %v2280_v6 = vpop.f32.mrb[13].mxu1  ;;  %v685_v28 = vmul.f32 %v2496_v26, %v3207_v44 }
 0x463   : > { %1854 = vrot.lane.b32.xlu1 %v1345_v5, %s2765_s29 }
 0x464   : > { %v1505_v8 = vpop.f32.mrb[14].mxu1 }
 0x465   : > { %v1510_v9 = vmul.f32 %v2490_v7, %v1505_v8  ;;  %v2290_v10 = vpop.f32.mrb[15].mxu1 }
 0x467   : > { %1858 = vrot.lane.b32.xlu0 %v1510_v9, %s2766_s21 }
 0x495   : > { %v1670_v17 = vpop.f32.mrb[16].mxu1 }
 0x496   : > { %v1675_v16 = vmul.f32 %v2492_v15, %v1670_v17  ;;  %v2300_v18 = vpop.f32.mrb[17].mxu1 }
 0x498   : > { %1862 = vrot.lane.b32.xlu1 %v1675_v16, %s2767_s19 }
 0x499   : > { %v1835_v20 = vpop.f32.mrb[18].mxu1 }
 0x49a   : > { %v1840_v21 = vmul.f32 %v2494_v19, %v1835_v20  ;;  %v2310_v22 = vpop.f32.mrb[19].mxu1 }
 0x49c   : > { %1866 = vrot.lane.b32.xlu0 %v1840_v21, %s2768_s16 }
 0x4c9   : > { %v1843_v24 = vpop.permute.xlu1 %1842 }
 0x4ca   : > { %v1869_v30 = vsel %vm521_vm2, %v685_v28, %v1843_v24 }
 0x4cd   : > { %v1847_v27 = vpop.permute.xlu0 %1846 }
 0x4ce   : > { %v1870_v31 = vsel %vm598_vm3, %v1869_v30, %v1847_v27 }
 0x4d1   : > { %v1851_v25 = vpop.permute.xlu1 %1850 }
 0x4d2   : > { %v1872_v33 = vsel %vm1871_vm4, %v1870_v31, %v1851_v25 }
 0x4d5   : > { %v1855_v29 = vpop.permute.xlu1 %1854 }
 0x4d6   : > { %v1874_v35 = vsel %vm1873_vm5, %v1872_v33, %v1855_v29 }
 0x4d9   : > { %v1859_v32 = vpop.permute.xlu0 %1858 }
 0x4da   : > { %v1876_v36 = vsel %vm1875_vm6, %v1874_v35, %v1859_v32 }
 0x50a   : > { %v1863_v34 = vpop.permute.xlu1 %1862 }
 0x50b   : > { %v1878_v37 = vsel %vm1877_vm7, %v1876_v36, %v1863_v34 }
 0x50e   : > { %v1867_v38 = vpop.permute.xlu0 %1866 }
 0x50f   : > { %v1880_v39 = vsel %vm1879_vm8, %v1878_v37, %v1867_v38 }
 0x510   : > { %2320 = vmatmul.mubr.msk.f32.vlgmr.msra.gmra.mrb[16].mxu0 %vm370_vm1, %v1880_v39 }
 0x5e3   : > { %v1961_v41 = vpop.f32.mrb[16].mxu0 }
 0x5e4   : > { %v1962_v42 = vadd.f32 %v2156_v40, %v1961_v41  ;;  %v2321_v43 = vpop.f32.mrb[17].mxu0 }
 0x5e6   : > { %1965 = vst.msk [vmem:[%s363_s14] sm:$0xff] %vm370_vm1, %v1962_v42 }
 0x5e7   : > { %2654 = shalt.err (!%p2651_p5)
}
 0x5e8   : > { %s2655_s18 = scalar_lea.hbm %s3222_s8, 128  ;;  %s2659_s29 = scalar_lea.hbm %s3278_s6, 256 }
 0x5e9   : > { %p2656_p6 = scmp.ne.s32.totalorder %s3222_s8, %s2655_s18  ;;  %p2660_p12 = scmp.lt.u32.totalorder %s3222_s8, %s3278_s6 }
 0x5ea   : > { %p2661_p11 = scmp.lt.u32.totalorder %s2659_s29, %s2655_s18  ;;  %p2663_p0 = scmp.lt.u32.totalorder %s2655_s18, %s3222_s8 }
 0x5eb   : > { %p2657_p10 = pnand %p2656_p6, %p3307_p2 }
 0x5ec   : > { %p2662_p9 = por %p2661_p11, %p2660_p12 }
 0x5ed   : > { %p2658_p7 = pneg %p2657_p10 }
 0x5ee   : > { %p2664_p4 = por %p2663_p0, %p2662_p9 }
 0x5f0   : > { %p2665_p8 = pnand %p2664_p4, %p2658_p7 }
 0x5f2   : > { %2668 = shalt.err (!%p2665_p8)
}
 0x5f3   : > { %2356 = dma.vmem_to_hbm [thread:$0]  (%p3307_p2), %s3224_s28, 128, %s3222_s8, %s1967_s12  }
 0x5f4 PF: > { %s3308_s16 = sld [smem:[#allocation17_spill]]  ;;  %s3309_s2 = sld [smem:[#allocation18_spill]] }
 0x5f5   : > { %p3311_p13 = scmp.ge.s32.totalorder %s2735_s26, 2 }
 0x5fa   : > { %s1993_s13 = sand.u32 1, %s3308_s16   ;;  %p3310_p1 = scmp.ne.s32.totalorder %s3309_s2, 0 }
 0x5fb   : > { %s1994_s4 = scalar_lea.sflag [#allocation4], %s1993_s13 }
 0x5fc   : > { %p2376_p3 = pnand %p3311_p13, %p3310_p1 }
 0x5fe   : > { %2710 = dma.done.wait (!%p2376_p3), %s1994_s4, 128  }
 0x5ff   : > { %2712 = vsyncadd (!%p2376_p3), %s1994_s4, 4294967168  ;;  %s26_s26 = sadd.s32 1, %s2735_s26   ;;  %s3312_s21 = smov %s2719_s22 }
 0x600   : > { %p23_p5 = scmp.ge.s32.totalorder %s26_s26, 4   ;;  %s3313_s22 = smov %s2723_s23 }
 0x601   : > { %s3314_s23 = smov %s2975_s15  ;;  %s3315_s24 = smov %s2731_s25 }
 0x602   : > { %s3316_s25 = smov %s3318_s10  ;;  %25 = sbr.rel (!%p23_p5) target bundleno = 13 (0xd), region = 114 }
 0x609   :  { %1999 = vsyncpa [#allocation3], 1 }
 0x60a   :  { %2001 = vsyncpa [#allocation3 + $0x1], 1 }
 0x60b   :  { %2002 = vsyncpa [#allocation6], 1 }
 0x60c   :  { %2004 = vsyncpa [#allocation6 + $0x1], 1 }
 0x60d   :  { %2005 = vsyncpa [#allocation9], 1 }
 0x60e   :  { %2006 = vsyncpa [#allocation4], 1 }
 0x60f   :  { %2008 = vsyncpa [#allocation4 + $0x1], 1 }

</bundles_post_ra>
